<compile_context>
chip_gen: v7x
topology: tpu7x:2x2x1
jax: 0.10.0
libtpu: 0.0.40
codegen_flags: <defaults>
</compile_context>

<pallas_src>
import functools

import jax
import jax.numpy as jnp
from jax.experimental import pallas as pl
from jax.experimental.pallas import tpu as pltpu


def _focal_elementwise(x, t, alpha: float, gamma: float):
    """weight * BCE_with_logits, elementwise, in f32.

    Shares e = exp(-|x|) between the numerically-stable sigmoid and the BCE log term,
    and fast-paths gamma in {0, 1, 2} to avoid the exp+log of jnp.power.
    """
    e = jnp.exp(-jnp.abs(x))                       # single shared EUP exp
    inv1pe = pl.reciprocal(1.0 + e)                # exact; flip approx=True for more EUP headroom
    p = jnp.where(x >= 0.0, inv1pe, e * inv1pe)    # sigmoid(x), stable for both signs
    bce = jnp.maximum(x, 0.0) - x * t + jnp.log1p(e)
    pt = p * t + (1.0 - p) * (1.0 - t)
    w = alpha * t + (1.0 - alpha) * (1.0 - t)
    one_m_pt = 1.0 - pt
    if gamma == 1.0:
        mod = one_m_pt
    elif gamma == 2.0:
        mod = one_m_pt * one_m_pt
    elif gamma == 0.0:
        mod = jnp.ones_like(one_m_pt)
    else:
        # clamp so pt -> 1 cannot produce log(0) -> NaN through the pow lowering
        mod = jnp.exp(gamma * jnp.log(jnp.maximum(one_m_pt, 1e-20)))
    return w * mod * bce


def _focal_loss_kernel(x_ref, tgt_ref, o_ref, acc_ref, *,
                       alpha: float, gamma: float, n_valid_rows: int,
                       tile_rows: int, inv_n_elems: float, single_logit: bool):
    core = pl.program_id(0)
    step = pl.program_id(1)
    steps = pl.num_programs(1)

    @pl.when(step == 0)
    def _init():
        acc_ref[...] = jnp.zeros_like(acc_ref)

    x = x_ref[...].astype(jnp.float32)             # (tile_rows, C)   [C == 1 in single-logit mode]
    tgt = tgt_ref[...]                             # (tile_rows, 1) int32

    # global row ids for this tile -> mask padded / partial-last-block rows
    row0 = (core * steps + step) * tile_rows
    rows = row0 + jax.lax.broadcasted_iota(jnp.int32, x.shape, 0)
    valid = rows < n_valid_rows

    if single_logit:
        # torch: input = cat([1 - x, x], axis=1) over 2 classes; done in-register.
        t1 = (tgt == 1).astype(jnp.float32)
        loss = (_focal_elementwise(1.0 - x, 1.0 - t1, alpha, gamma)
                + _focal_elementwise(x, t1, alpha, gamma))
    else:
        # one-hot built in-kernel (no HBM one-hot): t[r, c] = (c == target[r])
        cls = jax.lax.broadcasted_iota(jnp.int32, x.shape, 1)
        t = (cls == tgt).astype(jnp.float32)
        loss = _focal_elementwise(x, t, alpha, gamma)

    # hierarchical reduction: pure VPU accumulate per step, collapse once at the end.
    acc_ref[...] += jnp.where(valid, loss, 0.0)

    @pl.when(step == steps - 1)
    def _finalize():
        o_ref[0, 0] = jnp.sum(acc_ref[...]) * inv_n_elems


def focal_loss(inputs: jax.Array, target: jax.Array,
               alpha: float = 0.25, gamma: float = 1.0, *, tile_rows=None) -> jax.Array:
    """Pallas TPU implementation of FocalLoss.forward (reduction='mean')."""
    x = inputs
    if x.dtype not in (jnp.float32, jnp.bfloat16, jnp.float16):
        x = x.astype(jnp.float32)
    n, c = x.shape
    tgt = target.astype(jnp.int32).reshape(n, 1)

    single_logit = (c == 1)
    num_class = 2 if single_logit else c
    n_elems = n * num_class

    # pad tiny batches up to the 8-sublane granularity (padded rows masked in-kernel)
    if n < 8:
        x = jnp.pad(x, ((0, 8 - n), (0, 0)))
        tgt = jnp.pad(tgt, ((0, 8 - n), (0, 0)))
    n_rows = x.shape[0]

    # TODO(synk): for tiny C, repack (N, C) into a lane-dense (M, 128) slab (with in-kernel
    # target expansion) to fill vregs and avoid narrow strided VMEM writes.

    # Tile sizing: ~2 MiB of VMEM per (double-buffered) input block, accounting for the
    # 128-lane padding of the last dim; re-derived per call so it also fits v7x / v5e budgets.
    lanes = ((c + 127) // 128) * 128
    cap = max(8, (((2 << 20) // (lanes * 4)) // 8) * 8)
    max_tile = (n_rows // 8) * 8
    if tile_rows is None:
        tile_rows = min(cap, max_tile)
    tile_rows = max(8, min((int(tile_rows) // 8) * 8, max_tile))
    total_tiles = pl.cdiv(n_rows, tile_rows)

    # Leading "parallel" axis: split tiles across 2 TensorCores (v7x) when they divide evenly.
    n_cores = 2 if (total_tiles >= 2 and total_tiles % 2 == 0) else 1
    tiles_per_core = total_tiles // n_cores

    kernel = functools.partial(
        _focal_loss_kernel,
        alpha=float(alpha), gamma=float(gamma),
        n_valid_rows=n, tile_rows=tile_rows,
        inv_n_elems=1.0 / float(n_elems), single_logit=single_logit)

    partials = pl.pallas_call(
        kernel,
        out_shape=jax.ShapeDtypeStruct((n_cores, 1), jnp.float32),
        grid_spec=pltpu.PrefetchScalarGridSpec(
            num_scalar_prefetch=0,
            grid=(n_cores, tiles_per_core),
            in_specs=[
                pl.BlockSpec((tile_rows, c),
                             lambda ci, ji: (ci * tiles_per_core + ji, 0)),
                pl.BlockSpec((tile_rows, 1),
                             lambda ci, ji: (ci * tiles_per_core + ji, 0)),
            ],
            out_specs=pl.BlockSpec((1, 1), lambda ci, ji: (ci, 0),
                                   memory_space=pltpu.SMEM),
            scratch_shapes=[pltpu.VMEM((tile_rows, c), jnp.float32)],
        ),
        compiler_params=pltpu.CompilerParams(
            dimension_semantics=("parallel", "arbitrary"),
            vmem_limit_bytes=32 * 1024 * 1024,
        ),
    )(x, tgt)
    # one tiny partial per TensorCore; each is already divided by n_elems
    return jnp.sum(partials)


def _reference(inputs, target, alpha=0.25, gamma=1.0):
    x = inputs.astype(jnp.float32)
    if x.shape[1] == 1:
        x = jnp.concatenate([1.0 - x, x], axis=1)
        num_class = 2
    else:
        num_class = x.shape[1]
    t = jax.nn.one_hot(target.astype(jnp.int32), num_class, dtype=jnp.float32)
    p = jax.nn.sigmoid(x)
    pt = p * t + (1 - p) * (1 - t)
    w = alpha * t + (1 - alpha) * (1 - t)
    weight = w * (1 - pt) ** gamma
    bce = jnp.maximum(x, 0.0) - x * t + jnp.log1p(jnp.exp(-jnp.abs(x)))
    return jnp.mean(weight * bce)


if __name__ == "__main__":
    key = jax.random.PRNGKey(0)
    k1, k2, k3, k4 = jax.random.split(key, 4)

    # small shapes consistent with the module: batch=8, num_class=4
    N, C = 8, 4
    logits = jax.random.normal(k1, (N, C), dtype=jnp.float32)
    target = jax.random.randint(k2, (N,), 0, C, dtype=jnp.int32)
    loss = jax.block_until_ready(focal_loss(logits, target, alpha=0.25, gamma=1.0))
    ref = _reference(logits, target, alpha=0.25, gamma=1.0)
    assert jnp.allclose(loss, ref, atol=1e-5, rtol=1e-4), (loss, ref)

    # C == 1 branch (handled fully in-kernel, no wrapper concatenate)
    logits1 = jax.random.normal(k1, (N, 1), dtype=jnp.float32)
    target1 = jax.random.randint(k2, (N,), 0, 2, dtype=jnp.int32)
    loss1 = jax.block_until_ready(focal_loss(logits1, target1))
    ref1 = _reference(logits1, target1)
    assert jnp.allclose(loss1, ref1, atol=1e-5, rtol=1e-4), (loss1, ref1)

    # multi-tile / partial-last-block / two-partial path, with bf16 logits at the boundary
    N2, C2 = 1000, 4
    logits2 = jax.random.normal(k3, (N2, C2), dtype=jnp.float32).astype(jnp.bfloat16)
    target2 = jax.random.randint(k4, (N2,), 0, C2, dtype=jnp.int32)
    loss2 = jax.block_until_ready(focal_loss(logits2, target2, tile_rows=256))
    ref2 = _reference(logits2, target2)
    assert jnp.allclose(loss2, ref2, atol=1e-5, rtol=1e-4), (loss2, ref2)

    print("KERNEL_OK")
</pallas_src>

<mosaic_0001>
module attributes {stable_mosaic.version = 11 : i64} {
  func.func @_focal_loss_kernel(%arg0: i32, %arg1: i32, %arg2: memref<8x4xf32, #tpu.memory_space<vmem>>, %arg3: memref<8x1xi32, #tpu.memory_space<vmem>>, %arg4: memref<1x1xf32, #tpu.memory_space<smem>>, %arg5: memref<8x4xf32, #tpu.memory_space<vmem>>) attributes {dimension_semantics = [#tpu.dimension_semantics<parallel>, #tpu.dimension_semantics<arbitrary>], iteration_bounds = array<i64: 1, 1>, scalar_prefetch = 0 : i64, scratch_operands = 1 : i64, tpu.core_type = #tpu.core_type<tc>, window_params = [{transform_indices = @transform_0, window_bounds = array<i64: 8, 4>}, {transform_indices = @transform_1, window_bounds = array<i64: 8, 1>}, {transform_indices = @transform_2, window_bounds = array<i64: 1, 1>}]} {
    %c0_i32 = arith.constant 0 : i32
    %0 = arith.cmpi eq, %arg1, %c0_i32 : i32
    %1 = arith.extui %0 : i1 to i32
    %c0_i32_0 = arith.constant 0 : i32
    %2 = arith.cmpi ne, %1, %c0_i32_0 : i32
    scf.if %2 {
      %cst_21 = arith.constant 0.000000e+00 : f32
      %61 = vector.broadcast %cst_21 : f32 to vector<8x4xf32>
      %c0_22 = arith.constant 0 : index
      %c0_23 = arith.constant 0 : index
      %62 = vector.load %arg5[%c0_22, %c0_23] : memref<8x4xf32, #tpu.memory_space<vmem>>, vector<8x4xf32>
      tpu.vector_store %arg5[%c0_22, %c0_23], %61 {strides = array<i32>} : memref<8x4xf32, #tpu.memory_space<vmem>>, vector<8x4xf32>,
    } else {
    }
    %c0 = arith.constant 0 : index
    %c0_1 = arith.constant 0 : index
    %3 = vector.load %arg2[%c0, %c0_1] : memref<8x4xf32, #tpu.memory_space<vmem>>, vector<8x4xf32>
    %c0_2 = arith.constant 0 : index
    %c0_3 = arith.constant 0 : index
    %4 = vector.load %arg3[%c0_2, %c0_3] : memref<8x1xi32, #tpu.memory_space<vmem>>, vector<8x1xi32>
    %c1_i32 = arith.constant 1 : i32
    %5 = arith.muli %arg0, %c1_i32 : i32
    %6 = arith.addi %5, %arg1 : i32
    %c8_i32 = arith.constant 8 : i32
    %7 = arith.muli %6, %c8_i32 : i32
    %8 = tpu.iota {dimensions = array<i32: 0>} : vector<8x4xi32>
    %9 = vector.broadcast %7 : i32 to vector<8x4xi32>
    %10 = arith.addi %9, %8 : vector<8x4xi32>
    %c8_i32_4 = arith.constant 8 : i32
    %11 = vector.broadcast %c8_i32_4 : i32 to vector<8x4xi32>
    %12 = arith.cmpi slt, %10, %11 : vector<8x4xi32>
    %13 = tpu.iota {dimensions = array<i32: 1>} : vector<8x4xi32>
    %14 = vector.broadcast %4 : vector<8x1xi32> to vector<8x4xi32>
    %15 = arith.cmpi eq, %13, %14 : vector<8x4xi32>
    %16 = arith.extui %15 : vector<8x4xi1> to vector<8x4xi32>
    %17 = arith.sitofp %16 : vector<8x4xi32> to vector<8x4xf32>
    %18 = math.absf %3 : vector<8x4xf32>
    %cst = arith.constant 0.000000e+00 : f32
    %19 = vector.broadcast %cst : f32 to vector<8x4xf32>
    %20 = arith.subf %19, %18 : vector<8x4xf32>
    %21 = math.exp %20 : vector<8x4xf32>
    %cst_5 = arith.constant 1.000000e+00 : f32
    %22 = vector.broadcast %cst_5 : f32 to vector<8x4xf32>
    %23 = arith.addf %22, %21 : vector<8x4xf32>
    %24 = tpu.reciprocal %23 : vector<8x4xf32> -> vector<8x4xf32>
    %cst_6 = arith.constant 0.000000e+00 : f32
    %25 = vector.broadcast %cst_6 : f32 to vector<8x4xf32>
    %26 = arith.cmpf oge, %3, %25 : vector<8x4xf32>
    %27 = arith.mulf %21, %24 : vector<8x4xf32>
    %28 = arith.select %26, %24, %27 : vector<8x4xi1>, vector<8x4xf32>
    %cst_7 = arith.constant 0.000000e+00 : f32
    %29 = vector.broadcast %cst_7 : f32 to vector<8x4xf32>
    %30 = arith.maximumf %3, %29 : vector<8x4xf32>
    %31 = arith.mulf %3, %17 : vector<8x4xf32>
    %32 = arith.subf %30, %31 : vector<8x4xf32>
    %33 = math.log1p %21 : vector<8x4xf32>
    %34 = arith.addf %32, %33 : vector<8x4xf32>
    %35 = arith.mulf %28, %17 : vector<8x4xf32>
    %cst_8 = arith.constant 1.000000e+00 : f32
    %36 = vector.broadcast %cst_8 : f32 to vector<8x4xf32>
    %37 = arith.subf %36, %28 : vector<8x4xf32>
    %cst_9 = arith.constant 1.000000e+00 : f32
    %38 = vector.broadcast %cst_9 : f32 to vector<8x4xf32>
    %39 = arith.subf %38, %17 : vector<8x4xf32>
    %40 = arith.mulf %37, %39 : vector<8x4xf32>
    %41 = arith.addf %35, %40 : vector<8x4xf32>
    %cst_10 = arith.constant 2.500000e-01 : f32
    %42 = vector.broadcast %cst_10 : f32 to vector<8x4xf32>
    %43 = arith.mulf %42, %17 : vector<8x4xf32>
    %cst_11 = arith.constant 1.000000e+00 : f32
    %44 = vector.broadcast %cst_11 : f32 to vector<8x4xf32>
    %45 = arith.subf %44, %17 : vector<8x4xf32>
    %cst_12 = arith.constant 7.500000e-01 : f32
    %46 = vector.broadcast %cst_12 : f32 to vector<8x4xf32>
    %47 = arith.mulf %46, %45 : vector<8x4xf32>
    %48 = arith.addf %43, %47 : vector<8x4xf32>
    %cst_13 = arith.constant 1.000000e+00 : f32
    %49 = vector.broadcast %cst_13 : f32 to vector<8x4xf32>
    %50 = arith.subf %49, %41 : vector<8x4xf32>
    %51 = arith.mulf %48, %50 : vector<8x4xf32>
    %52 = arith.mulf %51, %34 : vector<8x4xf32>
    %c0_14 = arith.constant 0 : index
    %c0_15 = arith.constant 0 : index
    %53 = vector.load %arg5[%c0_14, %c0_15] : memref<8x4xf32, #tpu.memory_space<vmem>>, vector<8x4xf32>
    %cst_16 = arith.constant 0.000000e+00 : f32
    %54 = vector.broadcast %cst_16 : f32 to vector<8x4xf32>
    %55 = arith.select %12, %52, %54 : vector<8x4xi1>, vector<8x4xf32>
    %56 = arith.addf %53, %55 : vector<8x4xf32>
    %c0_17 = arith.constant 0 : index
    %c0_18 = arith.constant 0 : index
    %57 = vector.load %arg5[%c0_17, %c0_18] : memref<8x4xf32, #tpu.memory_space<vmem>>, vector<8x4xf32>
    tpu.vector_store %arg5[%c0_17, %c0_18], %56 {strides = array<i32>} : memref<8x4xf32, #tpu.memory_space<vmem>>, vector<8x4xf32>,
    %c0_i32_19 = arith.constant 0 : i32
    %58 = arith.cmpi eq, %arg1, %c0_i32_19 : i32
    %59 = arith.extui %58 : i1 to i32
    %c0_i32_20 = arith.constant 0 : i32
    %60 = arith.cmpi ne, %59, %c0_i32_20 : i32
    scf.if %60 {
      %c0_21 = arith.constant 0 : index
      %c0_22 = arith.constant 0 : index
      %61 = vector.load %arg5[%c0_21, %c0_22] : memref<8x4xf32, #tpu.memory_space<vmem>>, vector<8x4xf32>
      %62 = vector.shape_cast %61 : vector<8x4xf32> to vector<1x8x4xf32>
      %cst_23 = arith.constant dense<0.000000e+00> : vector<1xf32>
      %63 = vector.multi_reduction <add>, %62, %cst_23 [1, 2] : vector<1x8x4xf32> to vector<1xf32>
      %64 = vector.shape_cast %63 : vector<1xf32> to vector<1x1x1xf32>
      %65 = vector.extract %64[0, 0, 0] : f32 from vector<1x1x1xf32>
      %cst_24 = arith.constant 3.125000e-02 : f32
      %66 = arith.mulf %65, %cst_24 : f32
      %c0_25 = arith.constant 0 : index
      %c0_26 = arith.constant 0 : index
      %67 = memref.load %arg4[%c0_25, %c0_26] : memref<1x1xf32, #tpu.memory_space<smem>>
      memref.store %66, %arg4[%c0_25, %c0_26] : memref<1x1xf32, #tpu.memory_space<smem>>
    } else {
    }
    return
  }
  func.func @transform_0(%arg0: i32, %arg1: i32) -> (i32, i32) {
    %c1_i32 = arith.constant 1 : i32
    %0 = arith.muli %arg0, %c1_i32 : i32
    %1 = arith.addi %0, %arg1 : i32
    %c0_i32 = arith.constant 0 : i32
    %c0_i32_0 = arith.constant 0 : i32
    return %1, %c0_i32 : i32, i32
  }
  func.func @transform_1(%arg0: i32, %arg1: i32) -> (i32, i32) {
    %c1_i32 = arith.constant 1 : i32
    %0 = arith.muli %arg0, %c1_i32 : i32
    %1 = arith.addi %0, %arg1 : i32
    %c0_i32 = arith.constant 0 : i32
    %c0_i32_0 = arith.constant 0 : i32
    return %1, %c0_i32 : i32, i32
  }
  func.func @transform_2(%arg0: i32, %arg1: i32) -> (i32, i32) {
    %c0_i32 = arith.constant 0 : i32
    %c0_i32_0 = arith.constant 0 : i32
    return %arg0, %c0_i32 : i32, i32
  }
}

</mosaic_0001>

<bundles_post_ra>
// kernel: tpu_custom_call.1
= control target key start
LH: loop header
LB: loop body
LE: loop exit
PB: predicated region body
PF: predicated region fallthrough
CT: control target
= control target key end

     0   :  { %s213_s0 = inlined_call_operand.vmem [shape: f32[8,4], index: 0, kind: input, shape index: {}]   ;;  %s214_s1 = inlined_call_operand.vmem [shape: s32[8,1], index: 1, kind: input, shape index: {}]   ;;  %s215_s2 = inlined_call_operand.hbm [shape: f32[1,1], index: 2, kind: output, shape index: {}]  }
   0x1   :  { %v53_v0 = vld [vmem:[%s214_s1] sm:$0xff] }
   0x2   :  { %7 = vsyncpa [#allocation4], 0  ;;  %v174_v1 = vmov 0   ;;  %vm50_vm0 = vcmask 31744   ;;  %v175_v2 = vmov 0.0   ;;  %v52_v3 = vld [vmem:[%s213_s0] sm:$0xff]  ;;  %v61_v10 = vlaneseq }
   0x3   :  { %155 = vset.pattern.permute.xlu0 %v174_v1  ;;  %51 = vst.msk [vmem:[#allocation2] sm:$0xff] %vm50_vm0, %v175_v2  ;;  %v69_v4 = vand.u32 2147483647, %v52_v3  ;;  %vm75_vm1 = vcmp.ge.f32.partialorder %v52_v3, 0.0  ;;  %v78_v21 = vmax.f32 %v52_v3, 0.0  ;;  %s162_s15 = scalar_lea.hbm %s215_s2, 16 }
   0x4   :  { %64 = vperm.xlu0 %155, %v53_v0   ;;  %v62_v13 = vand.u32 127, %v61_v10  ;;  %p163_p0 = scmp.ne.s32.totalorder %s215_s2, %s162_s15  ;;  %p166_p1 = scmp.lt.u32.totalorder %s162_s15, %s215_s2 }
   0x5   :  { %v70_v5 = vsub.f32 0.0, %v69_v4 }
   0x6   :  { %p168_p2 = pnand %p166_p1, %p163_p0 }
   0x7   :  { %v71_v6 = vmul.f32 1.442695, %v70_v5 }
   0x9   :  { %156 = vpow2.f32 %v71_v6 }
   0xa   :  { %v102_v37 = vld [vmem:[#allocation2] sm:$0xff] }
  0x13   :  { %v157_v7 = vpop.eup %156 }
  0x14   :  { %v73_v8 = vadd.f32 1.0, %v157_v7  ;;  %v84_v12 = vmul.f32 -0.5, %v157_v7  ;;  %v87_v18 = vand.u32 2147483647, %v157_v7 }
  0x16   :  { %158 = vrcp.f32 %v73_v8  ;;  %v85_v16 = vadd.f32 1.0, %v84_v12  ;;  %vm88_vm3 = vcmp.lt.f32.partialorder %v87_v18, 0.0004427343 }
  0x17   :  { %160 = vlog2.f32 %v73_v8 }
  0x18   :  { %v86_v25 = vmul.f32 %v157_v7, %v85_v16 }
  0x20   :  { %v159_v9 = vpop.eup %158 }
  0x21   :  { %v76_v11 = vmul.f32 %v159_v9, %v157_v7  ;;  %v161_v17 = vpop.eup %160 }
  0x22   :  { %v83_v24 = vmul.f32 0.6931472, %v161_v17 }
  0x23   :  { %v77_v14 = vsel %vm75_vm1, %v159_v9, %v76_v11 }
  0x24   :  { %v92_v19 = vsub.f32 1.0, %v77_v14  ;;  %v89_v32 = vsel %vm88_vm3, %v86_v25, %v83_v24 }
  0x83   :  { %v65_v15 = vpop.permute.xlu0 %64 }
  0x84   :  { %vm66_vm2 = vcmp.eq.s32.totalorder %v62_v13, %v65_v15 }
  0x85   :  { %v149_v20 = vsel %vm66_vm2, 1.0, %v175_v2 }
  0x86   :  { %v79_v22 = vmul.f32 %v149_v20, %v52_v3  ;;  %v93_v23 = vsub.f32 1.0, %v149_v20  ;;  %v91_v26 = vmul.f32 %v149_v20, %v77_v14  ;;  %v96_v31 = vmul.f32 0.25, %v149_v20 }
  0x88   :  { %v94_v27 = vmul.f32 %v93_v23, %v92_v19  ;;  %v97_v28 = vmul.f32 0.75, %v93_v23  ;;  %v80_v29 = vsub.f32 %v78_v21, %v79_v22 }
  0x8a   :  { %v95_v30 = vadd.f32 %v94_v27, %v91_v26  ;;  %v98_v33 = vadd.f32 %v97_v28, %v96_v31  ;;  %v90_v35 = vadd.f32 %v89_v32, %v80_v29 }
  0x8c   :  { %v99_v34 = vsub.f32 1.0, %v95_v30 }
  0x8e   :  { %v100_v36 = vmul.f32 %v99_v34, %v98_v33 }
  0x90   :  { %v101_v38 = vmul.f32 %v100_v36, %v90_v35 }
  0x92   :  { %v104_v39 = vadd.f32 %v102_v37, %v101_v38 }
  0x94   :  { %106 = vst.msk [vmem:[#allocation2] sm:$0xff] %vm50_vm0, %v104_v39 }
  0x9b   :  { %v110_v40 = vld [vmem:[#allocation2] sm:$0xff] }
  0x9c   :  { %v111_v41 = vsel %vm50_vm0, %v110_v40, 0.0 }
  0x9d   :  { %112 = vadd.xlane.f32.xlu0 %v111_v41 }
 0x12a   :  { %v113_v42 = vpop.xlane.xlu0 %112 }
 0x12b   :  { %v114_v43 = vrot.slane %v113_v42, 4 }
 0x12d   :  { %v115_v44 = vadd.f32 %v114_v43, %v113_v42 }
 0x12f   :  { %v116_v45 = vrot.slane %v115_v44, 2 }
 0x131   :  { %v117_v46 = vadd.f32 %v116_v45, %v115_v44 }
 0x133   :  { %v118_v47 = vrot.slane %v117_v46, 1 }
 0x135   :  { %v119_v48 = vadd.f32 %v118_v47, %v117_v46 }
 0x137   :  { %150 = vpush %v119_v48 }
 0x168   :  { %s151_s0 = spop %150 }
 0x169   :  { %s121_s1 = smul.f32 0.03125, %s151_s0 }
 0x16b   :  { %123 = sst [smem:[#allocation3]] %s121_s1 }
 0x16c   :  { %171 = shalt.err (!%p168_p2)
}
 0x16d   :  { %s176_s20 = smov [#allocation3]  }
 0x16e   :  { %131 = dma.smem_to_hbm %s176_s20, 16, %s215_s2, [#allocation4]  }
 0x16f   :  { %172 = dma.done.wait [#allocation4], 16  }
 0x170   :  { %173 = vsyncadd [#allocation4], 4294967280 }
 0x171   :  { %135 = sfence }
 0x172   :  { %136 = vsyncpa [#allocation4], 1 }

</bundles_post_ra>
